<compile_context>
chip_gen: v6e
topology: v6e:2x2x1
jax: 0.10.0
libtpu: 0.0.40
codegen_flags: <defaults>
</compile_context>

<pallas_src>
import jax
import jax.numpy as jnp
from jax import lax
from jax.experimental import pallas as pl
from jax.experimental.pallas import tpu as pltpu


def _round_up(v, m):
    return (v + m - 1) // m * m


def _elu_f32(v):
    # F.elu, alpha = 1.0 — computed in f32 (v5e VPU/EUP have no bf16).
    return jnp.where(v > 0.0, v, jnp.exp(jnp.minimum(v, 0.0)) - 1.0)


def _vmem_capacity_bytes():
    try:
        return int(pltpu.get_tpu_info().vmem_capacity_bytes)
    except Exception:
        return 64 * 1024 * 1024  # conservative (v7x per-TensorCore)


# --------------------------------------------------------------------------
# Fused 3-layer SSGConv forward — everything VMEM resident, single launch.
# --------------------------------------------------------------------------
def _ssg3_fused_kernel(a_ref, x_ref, w1_ref, b1_ref, w2_ref, b2_ref,
                       w3_ref, b3_ref, o_ref):
    a = a_ref[...]  # bf16 [Np, Np], alpha already folded in

    def ssg_layer(h_bf16, w_ref, b_ref):
        # propagation:  prop = A' @ h      (bf16 operands, f32 accumulate)
        prop = jnp.dot(a, h_bf16, preferred_element_type=jnp.float32)
        # shared linear: prop @ W + b      (bf16 operands, f32 accumulate)
        y = jnp.dot(prop.astype(jnp.bfloat16), w_ref[...],
                    preferred_element_type=jnp.float32)
        return y + b_ref[...]

    y = _elu_f32(ssg_layer(x_ref[...], w1_ref, b1_ref))
    y = _elu_f32(ssg_layer(y.astype(jnp.bfloat16), w2_ref, b2_ref))
    o_ref[...] = ssg_layer(y.astype(jnp.bfloat16), w3_ref, b3_ref)


def ssgconv3_fused(a, x, w1, b1, w2, b2, w3, b3, *, vmem_limit_bytes):
    """a: [Np,Np] bf16 folded adjacency; x: [Np,Fp] bf16; w*: bf16; b*: f32."""
    n_p = a.shape[0]
    c_p = w3.shape[1]
    vspec = pl.BlockSpec(memory_space=pltpu.MemorySpace.VMEM)
    return pl.pallas_call(
        _ssg3_fused_kernel,
        out_shape=jax.ShapeDtypeStruct((n_p, c_p), jnp.float32),
        in_specs=[vspec] * 8,
        out_specs=vspec,
        compiler_params=pltpu.CompilerParams(
            vmem_limit_bytes=vmem_limit_bytes),
    )(a, x, w1, b1, w2, b2, w3, b3)


# --------------------------------------------------------------------------
# Plain-JAX glue: gcn_norm (improved=False, add_self_loops=True) densified,
# with alpha folded in.  Computed ONCE per graph (static across forwards).
# --------------------------------------------------------------------------
def build_norm_adj(edge_index, edge_weight, num_nodes):
    row, col = edge_index[0], edge_index[1]  # row = source, col = target
    w = jnp.zeros((num_nodes, num_nodes), jnp.float32).at[col, row].add(edge_weight)
    # add_remaining_self_loops: weight-1 self loop only for nodes without one.
    self_cnt = jnp.zeros((num_nodes,), jnp.float32).at[row].add(
        jnp.where(row == col, 1.0, 0.0))
    w = w + jnp.diag(jnp.where(self_cnt > 0.0, 0.0, 1.0))
    deg = jnp.sum(w, axis=1)                      # in-degree of target node
    dis = jnp.where(deg > 0.0, lax.rsqrt(deg), 0.0)
    # A_norm[dst, src] = deg^-1/2[dst] * w[dst,src] * deg^-1/2[src]
    return dis[:, None] * w * dis[None, :]


def prepare_graph(edge_index, edge_weight, num_nodes, *, alpha):
    a_norm = build_norm_adj(edge_index, edge_weight.astype(jnp.float32),
                            num_nodes)
    # Fold alpha:  h = alpha*x + (1-alpha)*A_norm x = (alpha*I + (1-alpha)*A) x
    return alpha * jnp.eye(num_nodes, dtype=jnp.float32) + (1.0 - alpha) * a_norm


# --------------------------------------------------------------------------
# Full model forward: elu(conv1) -> elu(conv2) -> conv3
# --------------------------------------------------------------------------
def model_forward(params, x, a_prime):
    n, f = x.shape
    h = params["w1"].shape[1]
    c = params["w3"].shape[1]

    # Pad to lane-dense, MXU-aligned shapes (zeros — mathematically identical;
    # padded node rows pick up bias/ELU values but never leak into real rows
    # because A's padded columns are zero, and the output is sliced).
    n_p = _round_up(n, 128)
    f_p = _round_up(f, 128)
    c_p = _round_up(c, 128)

    a_p = jnp.zeros((n_p, n_p), jnp.bfloat16).at[:n, :n].set(
        a_prime.astype(jnp.bfloat16))
    x_p = jnp.zeros((n_p, f_p), jnp.bfloat16).at[:n, :f].set(
        x.astype(jnp.bfloat16))
    w1_p = jnp.zeros((f_p, h), jnp.bfloat16).at[:f, :].set(
        params["w1"].astype(jnp.bfloat16))
    w2_p = params["w2"].astype(jnp.bfloat16)
    w3_p = jnp.zeros((h, c_p), jnp.bfloat16).at[:, :c].set(
        params["w3"].astype(jnp.bfloat16))
    b1 = params["b1"].astype(jnp.float32)
    b2 = params["b2"].astype(jnp.float32)
    b3_p = jnp.zeros((1, c_p), jnp.float32).at[:, :c].set(params["b3"])

    # VMEM working set (gridless specs => single buffer per array) + scratch.
    working = (2 * (n_p * n_p + n_p * f_p + f_p * h + h * h + h * c_p)   # bf16
               + 4 * (2 * h + c_p)                                       # biases
               + 4 * n_p * c_p                                           # output
               + 4 * 4 * n_p * h)                                        # intermediates
    cap = _vmem_capacity_bytes()
    assert working < int(0.8 * cap), (
        f"fused working set {working/2**20:.1f} MiB exceeds this chip's VMEM "
        f"({cap/2**20:.0f} MiB); needs the row-tiled fallback")
    vmem_limit = max(16 << 20, min(2 * working + (4 << 20), cap))

    out = ssgconv3_fused(a_p, x_p, w1_p, b1, w2_p, b2, w3_p, b3_p,
                         vmem_limit_bytes=int(vmem_limit))
    return out[:n, :c]


# --------------------------------------------------------------------------
# Parameters (weights stored as [in, out] = transpose of PyTorch Linear layout)
# --------------------------------------------------------------------------
def init_params(key, num_features, hidden, num_classes):
    ks = jax.random.split(key, 6)

    def lin_w(k, fin, fout):
        lim = 1.0 / float(fin) ** 0.5
        return jax.random.uniform(k, (fin, fout), jnp.float32, -lim, lim)

    def lin_b(k, fin, fout):
        lim = 1.0 / float(fin) ** 0.5
        return jax.random.uniform(k, (1, fout), jnp.float32, -lim, lim)

    return {
        "w1": lin_w(ks[0], num_features, hidden),
        "b1": lin_b(ks[1], num_features, hidden),
        "w2": lin_w(ks[2], hidden, hidden),
        "b2": lin_b(ks[3], hidden, hidden),
        "w3": lin_w(ks[4], hidden, num_classes),
        "b3": lin_b(ks[5], hidden, num_classes),
    }


# --------------------------------------------------------------------------
# References for correctness checks.
# --------------------------------------------------------------------------
def reference_forward_f32(params, x, a_prime):
    """Full-precision f32 reference (same math, XLA ops)."""
    hp = lax.Precision.HIGHEST
    x = x.astype(jnp.float32)

    def ssg(hv, w, b):
        return jnp.dot(jnp.dot(a_prime, hv, precision=hp), w, precision=hp) + b

    y = jax.nn.elu(ssg(x, params["w1"], params["b1"]))
    y = jax.nn.elu(ssg(y, params["w2"], params["b2"]))
    return ssg(y, params["w3"], params["b3"])


def reference_forward_bf16ops(params, x, a_prime):
    """Reference matching the kernel's numerics (bf16 dot operands, f32 acc)."""
    bf = lambda v: v.astype(jnp.bfloat16)

    def ssg(h_f32, w, b):
        prop = jnp.dot(bf(a_prime), bf(h_f32), preferred_element_type=jnp.float32)
        return jnp.dot(bf(prop), bf(w), preferred_element_type=jnp.float32) + b

    y = _elu_f32(ssg(x.astype(jnp.float32), params["w1"], params["b1"]))
    y = _elu_f32(ssg(y, params["w2"], params["b2"]))
    return ssg(y, params["w3"], params["b3"])


if __name__ == "__main__":
    # Small synthetic graph consistent with the module:
    #   hidden=128 fixed by the module; num_features=16, num_classes=8, N=64.
    N, F, H, C, E = 64, 16, 128, 8, 256
    ALPHA = 0.9

    key = jax.random.PRNGKey(0)
    k_x, k_src, k_dst, k_w, k_p = jax.random.split(key, 5)

    x = jax.random.normal(k_x, (N, F), jnp.float32)
    src = jax.random.randint(k_src, (E,), 0, N, jnp.int32)
    dst = jax.random.randint(k_dst, (E,), 0, N, jnp.int32)
    edge_index = jnp.stack([src, dst], axis=0)                 # [2, E]
    edge_weight = jax.random.uniform(k_w, (E,), jnp.float32, 0.1, 1.0)

    params = init_params(k_p, F, H, C)

    # Graph preprocessing is done once (static graph) outside the kernel path.
    a_prime = prepare_graph(edge_index, edge_weight, N, alpha=ALPHA)

    out = model_forward(params, x, a_prime)
    out = jax.block_until_ready(out)

    assert out.shape == (N, C)
    assert bool(jnp.all(jnp.isfinite(out)))

    # 1) Tight check vs a reference with identical numerics (bf16 MXU operands).
    ref_bf = reference_forward_bf16ops(params, x, a_prime)
    diff_bf = float(jnp.max(jnp.abs(out - ref_bf)))
    assert diff_bf < 2e-3, f"mismatch vs bf16-op reference: {diff_bf}"

    # 2) Loose check vs the full-precision f32 reference (bf16 rounding only).
    ref_f32 = reference_forward_f32(params, x, a_prime)
    diff_f32 = float(jnp.max(jnp.abs(out - ref_f32)))
    assert diff_f32 < 5e-2, f"mismatch vs f32 reference: {diff_f32}"

    print("KERNEL_OK")
</pallas_src>

<mosaic_0001>
module attributes {stable_mosaic.version = 11 : i64} {
  func.func @_ssg3_fused_kernel(%arg0: memref<128x128xbf16, #tpu.memory_space<vmem>>, %arg1: memref<128x128xbf16, #tpu.memory_space<vmem>>, %arg2: memref<128x128xbf16, #tpu.memory_space<vmem>>, %arg3: memref<1x128xf32, #tpu.memory_space<vmem>>, %arg4: memref<128x128xbf16, #tpu.memory_space<vmem>>, %arg5: memref<1x128xf32, #tpu.memory_space<vmem>>, %arg6: memref<128x128xbf16, #tpu.memory_space<vmem>>, %arg7: memref<1x128xf32, #tpu.memory_space<vmem>>, %arg8: memref<128x128xf32, #tpu.memory_space<vmem>>) attributes {dimension_semantics = [], scalar_prefetch = 0 : i64, scratch_operands = 0 : i64, tpu.core_type = #tpu.core_type<tc>} {
    %c0 = arith.constant 0 : index
    %c0_0 = arith.constant 0 : index
    %0 = vector.load %arg0[%c0, %c0_0] : memref<128x128xbf16, #tpu.memory_space<vmem>>, vector<128x128xbf16>
    %c0_1 = arith.constant 0 : index
    %c0_2 = arith.constant 0 : index
    %1 = vector.load %arg1[%c0_1, %c0_2] : memref<128x128xbf16, #tpu.memory_space<vmem>>, vector<128x128xbf16>
    %cst = arith.constant dense<0.000000e+00> : vector<128x128xf32>
    %2 = tpu.matmul %0, %1, %cst {dimension_numbers = #tpu.dot_dimension_numbers<[1], [0], [0], [1], [0, 0, 1, 1], [], []>} : vector<128x128xbf16>, vector<128x128xbf16>, vector<128x128xf32> -> vector<128x128xf32>
    %3 = arith.truncf %2 : vector<128x128xf32> to vector<128x128xbf16>
    %c0_3 = arith.constant 0 : index
    %c0_4 = arith.constant 0 : index
    %4 = vector.load %arg2[%c0_3, %c0_4] : memref<128x128xbf16, #tpu.memory_space<vmem>>, vector<128x128xbf16>
    %cst_5 = arith.constant dense<0.000000e+00> : vector<128x128xf32>
    %5 = tpu.matmul %3, %4, %cst_5 {dimension_numbers = #tpu.dot_dimension_numbers<[1], [0], [0], [1], [0, 0, 1, 1], [], []>} : vector<128x128xbf16>, vector<128x128xbf16>, vector<128x128xf32> -> vector<128x128xf32>
    %c0_6 = arith.constant 0 : index
    %c0_7 = arith.constant 0 : index
    %6 = vector.load %arg3[%c0_6, %c0_7] : memref<1x128xf32, #tpu.memory_space<vmem>>, vector<1x128xf32>
    %7 = vector.broadcast %6 : vector<1x128xf32> to vector<128x128xf32>
    %8 = arith.addf %5, %7 : vector<128x128xf32>
    %cst_8 = arith.constant 0.000000e+00 : f32
    %9 = vector.broadcast %cst_8 : f32 to vector<128x128xf32>
    %10 = arith.cmpf ogt, %8, %9 : vector<128x128xf32>
    %cst_9 = arith.constant 0.000000e+00 : f32
    %11 = vector.broadcast %cst_9 : f32 to vector<128x128xf32>
    %12 = arith.minimumf %8, %11 : vector<128x128xf32>
    %13 = math.exp %12 : vector<128x128xf32>
    %cst_10 = arith.constant 1.000000e+00 : f32
    %14 = vector.broadcast %cst_10 : f32 to vector<128x128xf32>
    %15 = arith.subf %13, %14 : vector<128x128xf32>
    %16 = arith.select %10, %8, %15 : vector<128x128xi1>, vector<128x128xf32>
    %17 = arith.truncf %16 : vector<128x128xf32> to vector<128x128xbf16>
    %cst_11 = arith.constant dense<0.000000e+00> : vector<128x128xf32>
    %18 = tpu.matmul %0, %17, %cst_11 {dimension_numbers = #tpu.dot_dimension_numbers<[1], [0], [0], [1], [0, 0, 1, 1], [], []>} : vector<128x128xbf16>, vector<128x128xbf16>, vector<128x128xf32> -> vector<128x128xf32>
    %19 = arith.truncf %18 : vector<128x128xf32> to vector<128x128xbf16>
    %c0_12 = arith.constant 0 : index
    %c0_13 = arith.constant 0 : index
    %20 = vector.load %arg4[%c0_12, %c0_13] : memref<128x128xbf16, #tpu.memory_space<vmem>>, vector<128x128xbf16>
    %cst_14 = arith.constant dense<0.000000e+00> : vector<128x128xf32>
    %21 = tpu.matmul %19, %20, %cst_14 {dimension_numbers = #tpu.dot_dimension_numbers<[1], [0], [0], [1], [0, 0, 1, 1], [], []>} : vector<128x128xbf16>, vector<128x128xbf16>, vector<128x128xf32> -> vector<128x128xf32>
    %c0_15 = arith.constant 0 : index
    %c0_16 = arith.constant 0 : index
    %22 = vector.load %arg5[%c0_15, %c0_16] : memref<1x128xf32, #tpu.memory_space<vmem>>, vector<1x128xf32>
    %23 = vector.broadcast %22 : vector<1x128xf32> to vector<128x128xf32>
    %24 = arith.addf %21, %23 : vector<128x128xf32>
    %cst_17 = arith.constant 0.000000e+00 : f32
    %25 = vector.broadcast %cst_17 : f32 to vector<128x128xf32>
    %26 = arith.cmpf ogt, %24, %25 : vector<128x128xf32>
    %cst_18 = arith.constant 0.000000e+00 : f32
    %27 = vector.broadcast %cst_18 : f32 to vector<128x128xf32>
    %28 = arith.minimumf %24, %27 : vector<128x128xf32>
    %29 = math.exp %28 : vector<128x128xf32>
    %cst_19 = arith.constant 1.000000e+00 : f32
    %30 = vector.broadcast %cst_19 : f32 to vector<128x128xf32>
    %31 = arith.subf %29, %30 : vector<128x128xf32>
    %32 = arith.select %26, %24, %31 : vector<128x128xi1>, vector<128x128xf32>
    %33 = arith.truncf %32 : vector<128x128xf32> to vector<128x128xbf16>
    %cst_20 = arith.constant dense<0.000000e+00> : vector<128x128xf32>
    %34 = tpu.matmul %0, %33, %cst_20 {dimension_numbers = #tpu.dot_dimension_numbers<[1], [0], [0], [1], [0, 0, 1, 1], [], []>} : vector<128x128xbf16>, vector<128x128xbf16>, vector<128x128xf32> -> vector<128x128xf32>
    %35 = arith.truncf %34 : vector<128x128xf32> to vector<128x128xbf16>
    %c0_21 = arith.constant 0 : index
    %c0_22 = arith.constant 0 : index
    %36 = vector.load %arg6[%c0_21, %c0_22] : memref<128x128xbf16, #tpu.memory_space<vmem>>, vector<128x128xbf16>
    %cst_23 = arith.constant dense<0.000000e+00> : vector<128x128xf32>
    %37 = tpu.matmul %35, %36, %cst_23 {dimension_numbers = #tpu.dot_dimension_numbers<[1], [0], [0], [1], [0, 0, 1, 1], [], []>} : vector<128x128xbf16>, vector<128x128xbf16>, vector<128x128xf32> -> vector<128x128xf32>
    %c0_24 = arith.constant 0 : index
    %c0_25 = arith.constant 0 : index
    %38 = vector.load %arg7[%c0_24, %c0_25] : memref<1x128xf32, #tpu.memory_space<vmem>>, vector<1x128xf32>
    %39 = vector.broadcast %38 : vector<1x128xf32> to vector<128x128xf32>
    %40 = arith.addf %37, %39 : vector<128x128xf32>
    %c0_26 = arith.constant 0 : index
    %c0_27 = arith.constant 0 : index
    %41 = vector.load %arg8[%c0_26, %c0_27] : memref<128x128xf32, #tpu.memory_space<vmem>>, vector<128x128xf32>
    tpu.vector_store %arg8[%c0_26, %c0_27], %40 {strides = array<i32>} : memref<128x128xf32, #tpu.memory_space<vmem>>, vector<128x128xf32>,
    return
  }
}

</mosaic_0001>

<bundles_post_ra>
// kernel: tpu_custom_call.1
= control target key start
LH: loop header
LB: loop body
LE: loop exit
PB: predicated region body
PF: predicated region fallthrough
CT: control target
= control target key end

     0   :  { %13 = vsyncpa [#allocation3], 0  ;;  %s2187_s0 = inlined_call_operand.hbm [shape: bf16[128,128], index: 0, kind: input, shape index: {}]   ;;  %s2188_s1 = inlined_call_operand.hbm [shape: bf16[128,128], index: 1, kind: input, shape index: {}]   ;;  %s2189_s2 = inlined_call_operand.hbm [shape: bf16[128,128], index: 2, kind: input, shape index: {}]   ;;  %s2190_s3 = inlined_call_operand.vmem [shape: f32[1,128], index: 3, kind: input, shape index: {}]   ;;  %s2191_s4 = inlined_call_operand.hbm [shape: bf16[128,128], index: 4, kind: input, shape index: {}]   ;;  %s2192_s5 = inlined_call_operand.vmem [shape: f32[1,128], index: 5, kind: input, shape index: {}]   ;;  %s2193_s6 = inlined_call_operand.hbm [shape: bf16[128,128], index: 6, kind: input, shape index: {}]   ;;  %s2194_s7 = inlined_call_operand.vmem [shape: f32[1,128], index: 7, kind: input, shape index: {}]   ;;  %s2195_s8 = inlined_call_operand.hbm [shape: f32[128,128], index: 8, kind: output, shape index: {}]  }
   0x1   :  { %14 = vsyncpa [#allocation6], 0 }
   0x2   :  { %15 = vsyncpa [#allocation9], 0 }
   0x3   :  { %16 = vsyncpa [#allocation4], 0  ;;  %s1894_s27 = smov [#allocation5]   ;;  %s1895_s29 = smov [#allocation8]  }
   0x4   :  { %s34_s28 = sshll.u32 %s1894_s27, 4  ;;  %s60_s30 = sshll.u32 %s1895_s29, 4  ;;  %s35_s28 = int_to_ptr.vmem [resolvable:$true] %s34_s28  ;;  %s61_s30 = int_to_ptr.vmem [resolvable:$true] %s60_s30 }
   0x5   :  { %s1774_s9 = scalar_lea.vmem %s35_s28, 1024  ;;  %p1779_p1 = scmp.lt.s32.totalorder %s35_s28, %s35_s28 }
   0x6   :  { %p1775_p0 = scmp.ne.s32.totalorder %s35_s28, %s1774_s9  ;;  %p1780_p2 = scmp.lt.s32.totalorder %s1774_s9, %s1774_s9 }
   0x8   :  { %p1781_p3 = por %p1780_p2, %p1779_p1 }
   0xa   :  { %p1782_p4 = pnand %p1781_p3, %p1775_p0 }
   0xc   :  { %1785 = shalt.err (!%p1782_p4)
}
   0xd   :  { %s1896_s10 = smov 64   ;;  %s1897_s11 = smov 4  }
   0xe   :  { %40 = dma.hbm_to_vmem [thread:$0]  %s2188_s1, 1024, %s35_s28, [#allocation6], %s1896_s10, %s1896_s10, %s1897_s11  }
   0xf   :  { %s1794_s14 = scalar_lea.vmem %s61_s30, 1024  ;;  %p1799_p6 = scmp.lt.s32.totalorder %s61_s30, %s61_s30 }
  0x10   :  { %p1795_p5 = scmp.ne.s32.totalorder %s61_s30, %s1794_s14  ;;  %p1800_p7 = scmp.lt.s32.totalorder %s1794_s14, %s1794_s14 }
  0x12   :  { %p1801_p8 = por %p1800_p7, %p1799_p6 }
  0x14   :  { %p1802_p9 = pnand %p1801_p8, %p1795_p5 }
  0x16   :  { %1805 = shalt.err (!%p1802_p9)
}
  0x17   :  { %66 = dma.hbm_to_vmem [thread:$0]  %s2191_s4, 1024, %s61_s30, [#allocation9], %s1896_s10, %s1896_s10, %s1897_s11  }
  0x18   :  { %s1898_s17 = smov [#allocation2]   ;;  %s1899_s19 = smov [#allocation7]  }
  0x19   :  { %s22_s18 = sshll.u32 %s1898_s17, 4  ;;  %s46_s20 = sshll.u32 %s1899_s19, 4  ;;  %s23_s18 = int_to_ptr.vmem [resolvable:$true] %s22_s18  ;;  %s47_s20 = int_to_ptr.vmem [resolvable:$true] %s46_s20 }
  0x1a   :  { %s1814_s1 = scalar_lea.vmem %s23_s18, 1024  ;;  %p1819_p11 = scmp.lt.s32.totalorder %s23_s18, %s23_s18 }
  0x1b   :  { %p1815_p10 = scmp.ne.s32.totalorder %s23_s18, %s1814_s1  ;;  %p1820_p12 = scmp.lt.s32.totalorder %s1814_s1, %s1814_s1 }
  0x1d   :  { %p1821_p13 = por %p1820_p12, %p1819_p11 }
  0x1f   :  { %p1822_p0 = pnand %p1821_p13, %p1815_p10 }
  0x21   :  { %1825 = shalt.err (!%p1822_p0)
}
  0x22   :  { %28 = dma.hbm_to_vmem [thread:$0]  %s2187_s0, 1024, %s23_s18, [#allocation3], %s1896_s10, %s1896_s10, %s1897_s11  }
  0x23   :  { %s1834_s4 = scalar_lea.vmem %s47_s20, 1024  ;;  %p1839_p2 = scmp.lt.s32.totalorder %s47_s20, %s47_s20 }
  0x24   :  { %p1835_p1 = scmp.ne.s32.totalorder %s47_s20, %s1834_s4  ;;  %p1840_p3 = scmp.lt.s32.totalorder %s1834_s4, %s1834_s4 }
  0x26   :  { %p1841_p4 = por %p1840_p3, %p1839_p2 }
  0x28   :  { %p1842_p5 = pnand %p1841_p4, %p1835_p1 }
  0x2a   :  { %1845 = shalt.err (!%p1842_p5)
}
  0x2b   :  { %52 = dma.hbm_to_vmem [thread:$0]  %s2189_s2, 1024, %s47_s20, [#allocation6], %s1896_s10, %s1896_s10, %s1897_s11  }
  0x2c   :  { %s1900_s25 = smov [#allocation10]  }
  0x2d   :  { %s74_s26 = sshll.u32 %s1900_s25, 4  ;;  %s75_s26 = int_to_ptr.vmem [resolvable:$true] %s74_s26 }
  0x2e   :  { %s1854_s27 = scalar_lea.vmem %s75_s26, 1024  ;;  %p1859_p7 = scmp.lt.s32.totalorder %s75_s26, %s75_s26 }
  0x2f   :  { %p1855_p6 = scmp.ne.s32.totalorder %s75_s26, %s1854_s27  ;;  %p1860_p8 = scmp.lt.s32.totalorder %s1854_s27, %s1854_s27 }
  0x31   :  { %p1861_p9 = por %p1860_p8, %p1859_p7 }
  0x33   :  { %p1862_p10 = pnand %p1861_p9, %p1855_p6 }
  0x35   :  { %1865 = shalt.err (!%p1862_p10)
}
  0x36   :  { %80 = dma.hbm_to_vmem [thread:$0]  %s2193_s6, 1024, %s75_s26, [#allocation9], %s1896_s10, %s1896_s10, %s1897_s11  }
  0x37   :  { %1886 = dma.done.wait [#allocation3], 1024  }
  0x38   :  { %1887 = vsyncadd [#allocation3], 4294966272 }
  0x39   :  { %1888 = dma.done.wait [#allocation6], 2048  }
  0x3a   :  { %1889 = vsyncadd [#allocation6], 4294965248 }
  0x3b   :  { %1890 = dma.done.wait [#allocation9], 2048  }
  0x3c   :  { %1891 = vsyncadd [#allocation9], 4294965248  ;;  %v1662_v0 = vld [vmem:[#allocation5 + $0x38] sm:$0xff]   ;;  %v1663_v1 = vld [vmem:[#allocation5 + $0x30] sm:$0xff]  }
  0x3d   :  { %1460 = vmatprep.subr.bf16.mxu0 %v1662_v0  ;;  %v1664_v2 = vld [vmem:[#allocation5 + $0x28] sm:$0xff]   ;;  %v1665_v3 = vld [vmem:[#allocation5 + $0x20] sm:$0xff]   ;;  %v1666_v5 = vld [vmem:[#allocation5 + $0x18] sm:$0xff]  }
  0x3e   :  { %1461 = vmatpush3.bf16.msra.mxu0 %v1662_v0  ;;  %v1979_v4 = vld [vmem:[#allocation2] sm:$0xff]   ;;  %v1667_v6 = vld [vmem:[#allocation5 + $0x10] sm:$0xff]   ;;  %v1678_v7 = vld [vmem:[#allocation7 + $0x38] sm:$0xff]  }
  0x3f   :  { %1462 = vmatprep.subr.bf16.mxu0 %v1663_v1  ;;  %1476 = vmatprep.mubr.bf16.mxu0 %v1979_v4  ;;  %v1679_v8 = vld [vmem:[#allocation7 + $0x30] sm:$0xff]   ;;  %v1668_v9 = vld [vmem:[#allocation5 + $0x8] sm:$0xff]   ;;  %v1669_v11 = vld [vmem:[#allocation5] sm:$0xff]  }
  0x40   :  { %1492 = vmatprep.subr.bf16.mxu1 %v1678_v7  ;;  %v1680_v10 = vld [vmem:[#allocation7 + $0x28] sm:$0xff]   ;;  %v1681_v12 = vld [vmem:[#allocation7 + $0x20] sm:$0xff]   ;;  %v1682_v13 = vld [vmem:[#allocation7 + $0x18] sm:$0xff]  }
  0x41   :  { %1493 = vmatpush3.bf16.msra.mxu1 %v1678_v7  ;;  %v1982_v14 = vld [vmem:[#allocation2 + $0x8] sm:$0xff]   ;;  %v1984_v15 = vld [vmem:[#allocation2 + $0x10] sm:$0xff]   ;;  %v1988_v17 = vld [vmem:[#allocation2 + $0x18] sm:$0xff]  }
  0x42   :  { %1463 = vmatpush3.bf16.msra.mxu0 %v1663_v1  ;;  %1494 = vmatprep.subr.bf16.mxu1 %v1679_v8  ;;  %v1683_v16 = vld [vmem:[#allocation7 + $0x10] sm:$0xff]   ;;  %v1990_v18 = vld [vmem:[#allocation2 + $0x20] sm:$0xff]   ;;  %v1994_v19 = vld [vmem:[#allocation2 + $0x28] sm:$0xff]  }
  0x43   :  { %1464 = vmatprep.subr.bf16.mxu0 %v1664_v2  ;;  %v1996_v20 = vld [vmem:[#allocation2 + $0x30] sm:$0xff]   ;;  %v2000_v21 = vld [vmem:[#allocation2 + $0x38] sm:$0xff]   ;;  %v1684_v22 = vld [vmem:[#allocation7 + $0x8] sm:$0xff]  }
  0x44   :  { %v1685_v23 = vld [vmem:[#allocation7] sm:$0xff]   ;;  %v1686_v48 = vld [vmem:[#allocation8 + $0x38] sm:$0xff]   ;;  %v1687_v49 = vld [vmem:[#allocation8 + $0x30] sm:$0xff]  }
  0x45   :  { %1495 = vmatpush3.bf16.msra.mxu1 %v1679_v8  ;;  %v1688_v50 = vld [vmem:[#allocation8 + $0x28] sm:$0xff]   ;;  %v1689_v51 = vld [vmem:[#allocation8 + $0x20] sm:$0xff]   ;;  %v1690_v52 = vld [vmem:[#allocation8 + $0x18] sm:$0xff]  }
  0x46   :  { %1465 = vmatpush3.bf16.msra.mxu0 %v1664_v2  ;;  %1496 = vmatprep.subr.bf16.mxu1 %v1680_v10  ;;  %v1691_v53 = vld [vmem:[#allocation8 + $0x10] sm:$0xff]   ;;  %v1305_v0 = vld [vmem:[%s2190_s3] ss:$0 sm:$0xff] }
  0x47   :  { %1466 = vmatprep.subr.bf16.mxu0 %v1665_v3 }
  0x49   :  { %1497 = vmatpush3.bf16.msra.mxu1 %v1680_v10 }
  0x4a   :  { %1467 = vmatpush3.bf16.msra.mxu0 %v1665_v3  ;;  %1498 = vmatprep.subr.bf16.mxu1 %v1681_v12 }
  0x4b   :  { %1468 = vmatprep.subr.bf16.mxu0 %v1666_v5 }
  0x4d   :  { %1499 = vmatpush3.bf16.msra.mxu1 %v1681_v12 }
  0x4e   :  { %1469 = vmatpush3.bf16.msra.mxu0 %v1666_v5  ;;  %1500 = vmatprep.subr.bf16.mxu1 %v1682_v13 }
  0x4f   :  { %1470 = vmatprep.subr.bf16.mxu0 %v1667_v6 }
  0x51   :  { %1501 = vmatpush3.bf16.msra.mxu1 %v1682_v13 }
  0x52   :  { %1471 = vmatpush3.bf16.msra.mxu0 %v1667_v6  ;;  %1502 = vmatprep.subr.bf16.mxu1 %v1683_v16 }
  0x53   :  { %1472 = vmatprep.subr.bf16.mxu0 %v1668_v9 }
  0x55   :  { %1503 = vmatpush3.bf16.msra.mxu1 %v1683_v16 }
  0x56   :  { %1473 = vmatpush3.bf16.msra.mxu0 %v1668_v9  ;;  %1504 = vmatprep.subr.bf16.mxu1 %v1684_v22 }
  0x57   :  { %1474 = vmatprep.subr.bf16.mxu0 %v1669_v11 }
  0x59   :  { %1505 = vmatpush3.bf16.msra.mxu1 %v1684_v22 }
  0x5a   :  { %1475 = vmatpush3.bf16.msra.mxu0 %v1669_v11  ;;  %1506 = vmatprep.subr.bf16.mxu1 %v1685_v23 }
  0x5d   :  { %1477 = vmatmul.mubr.bf16.vlgmr.msra.gmra.mxu0 %v1982_v14  ;;  %1507 = vmatpush3.bf16.msra.mxu1 %v1685_v23 }
  0x5e   :  { %1480 = vmatprep.mubr.bf16.mxu0 %v1984_v15  ;;  %1556 = vmatprep.subr.bf16.mxu1 %v1686_v48 }
  0x65   :  { %1481 = vmatmul.mubr.bf16.gmra.mxu0 %v1988_v17 }
  0x66   :  { %1484 = vmatprep.mubr.bf16.mxu0 %v1990_v18 }
  0x6d   :  { %1485 = vmatmul.mubr.bf16.gmra.mxu0 %v1994_v19 }
  0x6e   :  { %1488 = vmatprep.mubr.bf16.mxu0 %v1996_v20 }
  0x75   :  { %1489 = vmatmul.mubr.bf16.gmra.mxu0 %v2000_v21 }
  0x76   :  { %1540 = vmatprep.mubr.bf16.mxu0 %v1979_v4 }
 0x11d   :  { %v1478_v24 = vpop.f32.mrf.mxu0 }
 0x11f   :  { %v261_v25 = vpop.f32.mrf.mxu0 }
 0x121   :  { %v1479_v26 = vpop.f32.mrf.mxu0 }
 0x122   :  { %v325_v29 = vpack.c.bf16 %v1479_v26, %v1478_v24 }
 0x123   :  { %v264_v27 = vpop.f32.mrf.mxu0 }
 0x124   :  { %v324_v28 = vpack.c.bf16 %v264_v27, %v261_v25 }
 0x125   :  { %v1482_v30 = vpop.f32.mrf.mxu0 }
 0x126   :  { %1508 = vmatprep.mubr.bf16.mxu1 %v324_v28 }
 0x127   :  { %v277_v31 = vpop.f32.mrf.mxu0  ;;  %1509 = vmatmul.mubr.bf16.vlgmr.msra.gmra.mxu1 %v325_v29 }
 0x128   :  { %1557 = vmatpush3.bf16.msra.mxu1 %v1686_v48 }
 0x129   :  { %v1483_v32 = vpop.f32.mrf.mxu0  ;;  %1558 = vmatprep.subr.bf16.mxu1 %v1687_v49 }
 0x12a   :  { %v327_v35 = vpack.c.bf16 %v1483_v32, %v1482_v30 }
 0x12b   :  { %v280_v33 = vpop.f32.mrf.mxu0 }
 0x12c   :  { %v326_v34 = vpack.c.bf16 %v280_v33, %v277_v31  ;;  %1559 = vmatpush3.bf16.msra.mxu1 %v1687_v49 }
 0x12d   :  { %v1486_v36 = vpop.f32.mrf.mxu0  ;;  %1560 = vmatprep.subr.bf16.mxu1 %v1688_v50 }
 0x12e   :  { %1512 = vmatprep.mubr.bf16.mxu1 %v326_v34 }
 0x12f   :  { %v293_v37 = vpop.f32.mrf.mxu0  ;;  %1513 = vmatmul.mubr.bf16.gmra.mxu1 %v327_v35 }
 0x130   :  { %1561 = vmatpush3.bf16.msra.mxu1 %v1688_v50 }
 0x131   :  { %v1487_v38 = vpop.f32.mrf.mxu0  ;;  %1562 = vmatprep.subr.bf16.mxu1 %v1689_v51 }
 0x132   :  { %v329_v41 = vpack.c.bf16 %v1487_v38, %v1486_v36 }
 0x133   :  { %v296_v39 = vpop.f32.mrf.mxu0 }
 0x134   :  { %v328_v40 = vpack.c.bf16 %v296_v39, %v293_v37  ;;  %1563 = vmatpush3.bf16.msra.mxu1 %v1689_v51 }
 0x135   :  { %v1490_v42 = vpop.f32.mrf.mxu0  ;;  %1564 = vmatprep.subr.bf16.mxu1 %v1690_v52 }
 0x136   :  { %1516 = vmatprep.mubr.bf16.mxu1 %v328_v40 }
 0x137   :  { %v309_v43 = vpop.f32.mrf.mxu0  ;;  %1517 = vmatmul.mubr.bf16.gmra.mxu1 %v329_v41 }
 0x138   :  { %1565 = vmatpush3.bf16.msra.mxu1 %v1690_v52 }
 0x139   :  { %v1491_v44 = vpop.f32.mrf.mxu0  ;;  %1566 = vmatprep.subr.bf16.mxu1 %v1691_v53 }
 0x13a   :  { %v331_v47 = vpack.c.bf16 %v1491_v44, %v1490_v42 }
 0x13b   :  { %v312_v45 = vpop.f32.mrf.mxu0 }
 0x13c   :  { %v330_v46 = vpack.c.bf16 %v312_v45, %v309_v43  ;;  %1567 = vmatpush3.bf16.msra.mxu1 %v1691_v53 }
 0x13e   :  { %1520 = vmatprep.mubr.bf16.mxu1 %v330_v46 }
 0x13f   :  { %1521 = vmatmul.mubr.bf16.gmra.mxu1 %v331_v47 }
 0x1e7   :  { %v1510_v54 = vpop.f32.mrf.mxu1 }
 0x1e8   :  { %v2043_v48 = vadd.f32 %v1510_v54, %v1305_v0 }
 0x1e9   :  { %v2004_v55 = vpop.f32.mrf.mxu1 }
 0x1ea   :  { %vm502_vm13 = vcmp.gt.f32.partialorder %v2043_v48, 0.0 }
 0x1eb   :  { %v1511_v56 = vpop.f32.mrf.mxu1 }
 0x1ec   :  { %v2040_v45 = vadd.f32 %v1511_v56, %v1305_v0  ;;  %v518_v56 = vmin.f32 %v2043_v48, 0.0 }
 0x1ed   :  { %v440_v57 = vpop.f32.mrf.mxu1 }
 0x1ee   :  { %v519_v51 = vmin.f32 %v2040_v45, 0.0  ;;  %v2047_v52 = vadd.f32 %v1305_v0, %v440_v57  ;;  %v536_v57 = vmul.f32 1.442695, %v518_v56  ;;  %vm503_vm12 = vcmp.gt.f32.partialorder %v2040_v45, 0.0 }
 0x1ef   :  { %v1514_v58 = vpop.f32.mrf.mxu1 }
 0x1f0   :  { %v2028_v32 = vadd.f32 %v1514_v58, %v1305_v0  ;;  %vm501_vm14 = vcmp.gt.f32.partialorder %v2047_v52, 0.0 }
 0x1f1   :  { %v453_v59 = vpop.f32.mrf.mxu1 }
 0x1f2   :  { %v522_v42 = vmin.f32 %v2028_v32, 0.0  ;;  %v2038_v43 = vadd.f32 %v1305_v0, %v453_v59  ;;  %v2051_v59 = vadd.f32 %v1305_v0, %v2004_v55  ;;  %vm506_vm9 = vcmp.gt.f32.partialorder %v2028_v32, 0.0 }
 0x1f3   :  { %v1515_v60 = vpop.f32.mrf.mxu1 }
 0x1f4   :  { %v2025_v27 = vadd.f32 %v1515_v60, %v1305_v0  ;;  %v544_v49 = vmul.f32 1.442695, %v522_v42  ;;  %v520_v50 = vmin.f32 %v2038_v43, 0.0  ;;  %vm504_vm11 = vcmp.gt.f32.partialorder %v2038_v43, 0.0 }
 0x1f5   :  { %v456_v61 = vpop.f32.mrf.mxu1  ;;  %vm500_vm15 = vcmp.gt.f32.partialorder %v2051_v59, 0.0 }
 0x1f6   :  { %v523_v38 = vmin.f32 %v2025_v27, 0.0  ;;  %v2035_v39 = vadd.f32 %v1305_v0, %v456_v61  ;;  %v540_v60 = vmul.f32 1.442695, %v520_v50  ;;  %v538_v61 = vmul.f32 1.442695, %v519_v51 }
 0x1f7   :  { %v1518_v62 = vpop.f32.mrf.mxu1  ;;  %vm507_vm8 = vcmp.gt.f32.partialorder %v2025_v27, 0.0 }
 0x1f8   :  { %v2011_v5 = vadd.f32 %v1518_v62, %v1305_v0  ;;  %v546_v46 = vmul.f32 1.442695, %v523_v38  ;;  %v521_v47 = vmin.f32 %v2035_v39, 0.0  ;;  %vm505_vm10 = vcmp.gt.f32.partialorder %v2035_v39, 0.0 }
 0x1f9   :  { %v469_v63 = vpop.f32.mrf.mxu1 }
 0x1fa   :  { %v526_v13 = vmin.f32 %v2011_v5, 0.0  ;;  %v2022_v16 = vadd.f32 %v1305_v0, %v469_v63  ;;  %v542_v53 = vmul.f32 1.442695, %v521_v47  ;;  %v517_v63 = vmin.f32 %v2047_v52, 0.0 }
 0x1fb   :  { %v1519_v1 = vpop.f32.mrf.mxu1  ;;  %vm510_vm5 = vcmp.gt.f32.partialorder %v2011_v5, 0.0 }
 0x1fc   :  { %v2009_v2 = vadd.f32 %v1519_v1, %v1305_v0  ;;  %v552_v34 = vmul.f32 1.442695, %v526_v13  ;;  %v524_v35 = vmin.f32 %v2022_v16, 0.0  ;;  %vm508_vm7 = vcmp.gt.f32.partialorder %v2022_v16, 0.0 }
 0x1fd   :  { %v472_v3 = vpop.f32.mrf.mxu1 }
 0x1fe   :  { %v527_v7 = vmin.f32 %v2009_v2, 0.0  ;;  %v2016_v10 = vadd.f32 %v1305_v0, %v472_v3  ;;  %v548_v44 = vmul.f32 1.442695, %v524_v35  ;;  %vm511_vm4 = vcmp.gt.f32.partialorder %v2009_v2, 0.0 }
 0x1ff   :  { %v1522_v6 = vpop.f32.mrf.mxu1 }
 0x200   :  { %v2014_v8 = vadd.f32 %v1522_v6, %v1305_v0  ;;  %v554_v23 = vmul.f32 1.442695, %v527_v7  ;;  %v525_v29 = vmin.f32 %v2016_v10, 0.0  ;;  %v516_v6 = vmin.f32 %v2051_v59, 0.0 }
 0x201   :  { %v485_v9 = vpop.f32.mrf.mxu1  ;;  %vm509_vm6 = vcmp.gt.f32.partialorder %v2016_v10, 0.0 }
 0x202   :  { %v530_v11 = vmin.f32 %v2014_v8, 0.0  ;;  %v2019_v12 = vadd.f32 %v1305_v0, %v485_v9  ;;  %v550_v40 = vmul.f32 1.442695, %v525_v29  ;;  %vm514_vm0 = vcmp.gt.f32.partialorder %v2014_v8, 0.0 }
 0x203   :  { %v1523_v22 = vpop.f32.mrf.mxu1  ;;  %v532_v29 = vmul.f32 1.442695, %v516_v6 }
 0x204   :  { %v560_v24 = vmul.f32 1.442695, %v530_v11  ;;  %v528_v25 = vmin.f32 %v2019_v12, 0.0  ;;  %v497_v26 = vadd.f32 %v1523_v22, %v1305_v0  ;;  %v534_v11 = vmul.f32 1.442695, %v517_v63 }
 0x205   :  { %v488_v28 = vpop.f32.mrf.mxu1  ;;  %vm512_vm2 = vcmp.gt.f32.partialorder %v2019_v12, 0.0 }
 0x206   :  { %1702 = vpow2.f32 %v560_v24  ;;  %v556_v30 = vmul.f32 1.442695, %v528_v25  ;;  %v531_v31 = vmin.f32 %v497_v26, 0.0  ;;  %v2030_v33 = vadd.f32 %v1305_v0, %v488_v28 }
 0x207   :  { %1704 = vpow2.f32 %v554_v23  ;;  %vm515_vm1 = vcmp.gt.f32.partialorder %v497_v26, 0.0 }
 0x208   :  { %v562_v36 = vmul.f32 1.442695, %v531_v31  ;;  %1706 = vpow2.f32 %v556_v30  ;;  %v529_v37 = vmin.f32 %v2030_v33, 0.0  ;;  %vm513_vm3 = vcmp.gt.f32.partialorder %v2030_v33, 0.0 }
 0x20a   :  { %1708 = vpow2.f32 %v562_v36  ;;  %v558_v41 = vmul.f32 1.442695, %v529_v37 }
 0x20b   :  { %1710 = vpow2.f32 %v552_v34 }
 0x20c   :  { %1712 = vpow2.f32 %v558_v41 }
 0x20d   :  { %1714 = vpow2.f32 %v550_v40 }
 0x20e   :  { %1716 = vpow2.f32 %v548_v44 }
 0x20f   :  { %1718 = vpow2.f32 %v546_v46 }
 0x210   :  { %1720 = vpow2.f32 %v544_v49 }
 0x211   :  { %1722 = vpow2.f32 %v542_v53 }
 0x212   :  { %1724 = vpow2.f32 %v540_v60 }
 0x213   :  { %v1703_v58 = vpop.eup %1702  ;;  %1726 = vpow2.f32 %v538_v61 }
 0x214   :  { %v1705_v54 = vpop.eup %1704  ;;  %v1328_v1 = vadd.f32 -1.0, %v1703_v58  ;;  %1728 = vpow2.f32 %v536_v57 }
 0x215   :  { %v1707_v62 = vpop.eup %1706  ;;  %v1325_v23 = vadd.f32 -1.0, %v1705_v54  ;;  %1730 = vpow2.f32 %v534_v11 }
 0x216   :  { %v1326_v55 = vadd.f32 -1.0, %v1707_v62  ;;  %v594_v13 = vsel %vm514_vm0, %v2014_v8, %v1328_v1  ;;  %1732 = vpow2.f32 %v532_v29 }
 0x217   :  { %v1709_v3 = vpop.eup %1708  ;;  %v591_v35 = vsel %vm511_vm4, %v2009_v2, %v1325_v23 }
 0x218   :  { %v1329_v7 = vadd.f32 -1.0, %v1709_v3  ;;  %v1711_v9 = vpop.eup %1710  ;;  %v592_v34 = vsel %vm512_vm2, %v2019_v12, %v1326_v55 }
 0x219   :  { %v1713_v0 = vpop.eup %1712  ;;  %v1324_v30 = vadd.f32 -1.0, %v1711_v9 }
 0x21a   :  { %v595_v22 = vsel %vm515_vm1, %v497_v26, %v1329_v7  ;;  %v1715_v24 = vpop.eup %1714  ;;  %v1327_v28 = vadd.f32 -1.0, %v1713_v0 }
 0x21b   :  { %v603_v25 = vpack.c.bf16 %v595_v22, %v594_v13  ;;  %v1717_v31 = vpop.eup %1716  ;;  %v1323_v36 = vadd.f32 -1.0, %v1715_v24  ;;  %v590_v38 = vsel %vm510_vm5, %v2011_v5, %v1324_v30 }
 0x21c   :  { %v593_v8 = vsel %vm513_vm3, %v2030_v33, %v1327_v28  ;;  %v1719_v37 = vpop.eup %1718  ;;  %v1322_v40 = vadd.f32 -1.0, %v1717_v31  ;;  %v601_v12 = vpack.c.bf16 %v591_v35, %v590_v38 }
 0x21d   :  { %1524 = vmatprep.subr.bf16.mxu0 %v603_v25  ;;  %v602_v26 = vpack.c.bf16 %v593_v8, %v592_v34  ;;  %v1721_v41 = vpop.eup %1720  ;;  %v589_v33 = vsel %vm509_vm6, %v2016_v10, %v1323_v36  ;;  %v1321_v42 = vadd.f32 -1.0, %v1719_v37 }
 0x21e   :  { %1525 = vmatpush3.bf16.msra.mxu0 %v603_v25  ;;  %v1723_v44 = vpop.eup %1722  ;;  %v588_v2 = vsel %vm508_vm7, %v2022_v16, %v1322_v40  ;;  %v1320_v46 = vadd.f32 -1.0, %v1721_v41  ;;  %v1694_v41 = vld [vmem:[#allocation10 + $0x38] sm:$0xff]  }
 0x21f   :  { %1526 = vmatprep.subr.bf16.mxu0 %v602_v26  ;;  %v1725_v47 = vpop.eup %1724  ;;  %v600_v5 = vpack.c.bf16 %v589_v33, %v588_v2  ;;  %v587_v50 = vsel %vm507_vm8, %v2025_v27, %v1321_v42  ;;  %v1319_v51 = vadd.f32 -1.0, %v1723_v44  ;;  %v1696_v33 = vld [vmem:[#allocation10 + $0x28] sm:$0xff]   ;;  %v1697_v42 = vld [vmem:[#allocation10 + $0x20] sm:$0xff]   ;;  %v1698_v44 = vld [vmem:[#allocation10 + $0x18] sm:$0xff]  }
 0x220   :  { %v1727_v49 = vpop.eup %1726  ;;  %v586_v53 = vsel %vm506_vm9, %v2028_v32, %v1320_v46  ;;  %v1318_v58 = vadd.f32 -1.0, %v1725_v47  ;;  %v1699_v2 = vld [vmem:[#allocation10 + $0x10] sm:$0xff]  }
 0x221   :  { %v1729_v10 = vpop.eup %1728  ;;  %v599_v16 = vpack.c.bf16 %v587_v50, %v586_v53  ;;  %v585_v56 = vsel %vm505_vm10, %v2035_v39, %v1319_v51  ;;  %v1317_v60 = vadd.f32 -1.0, %v1727_v49 }
 0x222   :  { %1527 = vmatpush3.bf16.msra.mxu0 %v602_v26  ;;  %v1731_v54 = vpop.eup %1730  ;;  %v584_v27 = vsel %vm504_vm11, %v2038_v43, %v1318_v58  ;;  %v1316_v61 = vadd.f32 -1.0, %v1729_v10 }
 0x223   :  { %1528 = vmatprep.subr.bf16.mxu0 %v601_v12  ;;  %v1733_v62 = vpop.eup %1732  ;;  %v598_v63 = vpack.c.bf16 %v585_v56, %v584_v27  ;;  %v583_v32 = vsel %vm503_vm12, %v2040_v45, %v1317_v60  ;;  %v1315_v1 = vadd.f32 -1.0, %v1731_v54  ;;  %v1692_v45 = vld [vmem:[#allocation8 + $0x8] sm:$0xff]   ;;  %v1330_v56 = vld [vmem:[%s2192_s5] ss:$0 sm:$0xff] }
 0x224   :  { %v582_v39 = vsel %vm502_vm13, %v2043_v48, %v1316_v61  ;;  %v1314_v3 = vadd.f32 -1.0, %v1733_v62  ;;  %1568 = vmatprep.subr.bf16.mxu1 %v1692_v45  ;;  %v1693_v48 = vld [vmem:[#allocation8] sm:$0xff]  }
 0x225   :  { %v597_v57 = vpack.c.bf16 %v583_v32, %v582_v39  ;;  %v581_v43 = vsel %vm501_vm14, %v2047_v52, %v1315_v1  ;;  %1569 = vmatpush3.bf16.msra.mxu1 %v1692_v45 }
 0x226   :  { %1529 = vmatpush3.bf16.msra.mxu0 %v601_v12  ;;  %v580_v6 = vsel %vm500_vm15, %v2051_v59, %v1314_v3  ;;  %1570 = vmatprep.subr.bf16.mxu1 %v1693_v48  ;;  %v1695_v12 = vld [vmem:[#allocation10 + $0x30] sm:$0xff]  }
 0x227   :  { %1530 = vmatprep.subr.bf16.mxu0 %v600_v5  ;;  %v596_v7 = vpack.c.bf16 %v581_v43, %v580_v6 }
 0x229   :  { %1571 = vmatpush3.bf16.msra.mxu1 %v1693_v48 }
 0x22a   :  { %1531 = vmatpush3.bf16.msra.mxu0 %v600_v5  ;;  %1620 = vmatprep.subr.bf16.mxu1 %v1694_v41 }
 0x22b   :  { %1532 = vmatprep.subr.bf16.mxu0 %v599_v16 }
 0x22e   :  { %1533 = vmatpush3.bf16.msra.mxu0 %v599_v16 }
 0x22f   :  { %1534 = vmatprep.subr.bf16.mxu0 %v598_v63 }
 0x232   :  { %1535 = vmatpush3.bf16.msra.mxu0 %v598_v63 }
 0x233   :  { %1536 = vmatprep.subr.bf16.mxu0 %v597_v57 }
 0x236   :  { %1537 = vmatpush3.bf16.msra.mxu0 %v597_v57 }
 0x237   :  { %1538 = vmatprep.subr.bf16.mxu0 %v596_v7 }
 0x23a   :  { %1539 = vmatpush3.bf16.msra.mxu0 %v596_v7 }
 0x23d   :  { %1541 = vmatmul.mubr.bf16.vlgmr.msra.gmra.mxu0 %v1982_v14 }
 0x23e   :  { %1544 = vmatprep.mubr.bf16.mxu0 %v1984_v15 }
 0x245   :  { %1545 = vmatmul.mubr.bf16.gmra.mxu0 %v1988_v17 }
 0x246   :  { %1548 = vmatprep.mubr.bf16.mxu0 %v1990_v18 }
 0x24d   :  { %1549 = vmatmul.mubr.bf16.gmra.mxu0 %v1994_v19 }
 0x24e   :  { %1552 = vmatprep.mubr.bf16.mxu0 %v1996_v20 }
 0x255   :  { %1553 = vmatmul.mubr.bf16.gmra.mxu0 %v2000_v21 }
 0x256   :  { %1604 = vmatprep.mubr.bf16.mxu0 %v1979_v4 }
 0x2fd   :  { %v1542_v52 = vpop.f32.mrf.mxu0 }
 0x2ff   :  { %v638_v59 = vpop.f32.mrf.mxu0 }
 0x301   :  { %v1543_v9 = vpop.f32.mrf.mxu0 }
 0x302   :  { %v702_v11 = vpack.c.bf16 %v1543_v9, %v1542_v52 }
 0x303   :  { %v641_v55 = vpop.f32.mrf.mxu0 }
 0x304   :  { %v701_v0 = vpack.c.bf16 %v641_v55, %v638_v59 }
 0x305   :  { %v1546_v13 = vpop.f32.mrf.mxu0 }
 0x306   :  { %1572 = vmatprep.mubr.bf16.mxu1 %v701_v0 }
 0x307   :  { %v654_v22 = vpop.f32.mrf.mxu0  ;;  %1573 = vmatmul.mubr.bf16.vlgmr.msra.gmra.mxu1 %v702_v11 }
 0x308   :  { %1621 = vmatpush3.bf16.msra.mxu1 %v1694_v41 }
 0x309   :  { %v1547_v23 = vpop.f32.mrf.mxu0  ;;  %1622 = vmatprep.subr.bf16.mxu1 %v1695_v12 }
 0x30a   :  { %v704_v4 = vpack.c.bf16 %v1547_v23, %v1546_v13 }
 0x30b   :  { %v657_v24 = vpop.f32.mrf.mxu0 }
 0x30c   :  { %v703_v25 = vpack.c.bf16 %v657_v24, %v654_v22  ;;  %1623 = vmatpush3.bf16.msra.mxu1 %v1695_v12 }
 0x30d   :  { %v1550_v28 = vpop.f32.mrf.mxu0  ;;  %1624 = vmatprep.subr.bf16.mxu1 %v1696_v33 }
 0x30e   :  { %1576 = vmatprep.mubr.bf16.mxu1 %v703_v25 }
 0x30f   :  { %v670_v29 = vpop.f32.mrf.mxu0  ;;  %1577 = vmatmul.mubr.bf16.gmra.mxu1 %v704_v4 }
 0x310   :  { %1625 = vmatpush3.bf16.msra.mxu1 %v1696_v33 }
 0x311   :  { %v1551_v30 = vpop.f32.mrf.mxu0  ;;  %1626 = vmatprep.subr.bf16.mxu1 %v1697_v42 }
 0x312   :  { %v706_v8 = vpack.c.bf16 %v1551_v30, %v1550_v28 }
 0x313   :  { %v673_v31 = vpop.f32.mrf.mxu0 }
 0x314   :  { %v705_v34 = vpack.c.bf16 %v673_v31, %v670_v29  ;;  %1627 = vmatpush3.bf16.msra.mxu1 %v1697_v42 }
 0x315   :  { %v1554_v26 = vpop.f32.mrf.mxu0  ;;  %1628 = vmatprep.subr.bf16.mxu1 %v1698_v44 }
 0x316   :  { %1580 = vmatprep.mubr.bf16.mxu1 %v705_v34 }
 0x317   :  { %v686_v35 = vpop.f32.mrf.mxu0  ;;  %1581 = vmatmul.mubr.bf16.gmra.mxu1 %v706_v8 }
 0x318   :  { %1629 = vmatpush3.bf16.msra.mxu1 %v1698_v44 }
 0x319   :  { %v1555_v36 = vpop.f32.mrf.mxu0  ;;  %1630 = vmatprep.subr.bf16.mxu1 %v1699_v2 }
 0x31a   :  { %v708_v40 = vpack.c.bf16 %v1555_v36, %v1554_v26 }
 0x31b   :  { %v689_v37 = vpop.f32.mrf.mxu0 }
 0x31c   :  { %v707_v38 = vpack.c.bf16 %v689_v37, %v686_v35  ;;  %1631 = vmatpush3.bf16.msra.mxu1 %v1699_v2 }
 0x31e   :  { %1584 = vmatprep.mubr.bf16.mxu1 %v707_v38 }
 0x31f   :  { %1585 = vmatmul.mubr.bf16.gmra.mxu1 %v708_v40 }
 0x3c7   :  { %v1574_v46 = vpop.f32.mrf.mxu1 }
 0x3c8   :  { %v2132_v40 = vadd.f32 %v1574_v46, %v1330_v56 }
 0x3c9   :  { %v2093_v47 = vpop.f32.mrf.mxu1 }
 0x3ca   :  { %vm879_vm13 = vcmp.gt.f32.partialorder %v2132_v40, 0.0 }
 0x3cb   :  { %v1575_v5 = vpop.f32.mrf.mxu1 }
 0x3cc   :  { %v2129_v36 = vadd.f32 %v1575_v5, %v1330_v56  ;;  %v895_v5 = vmin.f32 %v2132_v40, 0.0 }
 0x3cd   :  { %v817_v49 = vpop.f32.mrf.mxu1 }
 0x3ce   :  { %v896_v33 = vmin.f32 %v2129_v36, 0.0  ;;  %v2136_v42 = vadd.f32 %v1330_v56, %v817_v49  ;;  %v913_v49 = vmul.f32 1.442695, %v895_v5  ;;  %vm880_vm12 = vcmp.gt.f32.partialorder %v2129_v36, 0.0 }
 0x3cf   :  { %v1578_v50 = vpop.f32.mrf.mxu1 }
 0x3d0   :  { %v2117_v22 = vadd.f32 %v1578_v50, %v1330_v56  ;;  %v2140_v50 = vadd.f32 %v1330_v56, %v2093_v47  ;;  %vm878_vm14 = vcmp.gt.f32.partialorder %v2136_v42, 0.0 }
 0x3d1   :  { %v830_v51 = vpop.f32.mrf.mxu1 }
 0x3d2   :  { %v899_v8 = vmin.f32 %v2117_v22, 0.0  ;;  %v2127_v26 = vadd.f32 %v1330_v56, %v830_v51  ;;  %vm883_vm9 = vcmp.gt.f32.partialorder %v2117_v22, 0.0  ;;  %vm877_vm15 = vcmp.gt.f32.partialorder %v2140_v50, 0.0 }
 0x3d3   :  { %v1579_v10 = vpop.f32.mrf.mxu1 }
 0x3d4   :  { %v2114_v9 = vadd.f32 %v1579_v10, %v1330_v56  ;;  %v921_v41 = vmul.f32 1.442695, %v899_v8  ;;  %v897_v12 = vmin.f32 %v2127_v26, 0.0  ;;  %v915_v10 = vmul.f32 1.442695, %v896_v33 }
 0x3d5   :  { %v833_v53 = vpop.f32.mrf.mxu1  ;;  %vm881_vm11 = vcmp.gt.f32.partialorder %v2127_v26, 0.0 }
 0x3d6   :  { %v900_v29 = vmin.f32 %v2114_v9, 0.0  ;;  %v2124_v30 = vadd.f32 %v1330_v56, %v833_v53  ;;  %v917_v51 = vmul.f32 1.442695, %v897_v12  ;;  %vm884_vm8 = vcmp.gt.f32.partialorder %v2114_v9, 0.0 }
 0x3d7   :  { %v1582_v58 = vpop.f32.mrf.mxu1 }
 0x3d8   :  { %v2100_v61 = vadd.f32 %v1582_v58, %v1330_v56  ;;  %v923_v37 = vmul.f32 1.442695, %v900_v29  ;;  %v898_v38 = vmin.f32 %v2124_v30, 0.0  ;;  %v894_v58 = vmin.f32 %v2136_v42, 0.0 }
 0x3d9   :  { %v846_v16 = vpop.f32.mrf.mxu1  ;;  %vm882_vm10 = vcmp.gt.f32.partialorder %v2124_v30, 0.0 }
 0x3da   :  { %v903_v43 = vmin.f32 %v2100_v61, 0.0  ;;  %v2111_v6 = vadd.f32 %v1330_v56, %v846_v16  ;;  %v919_v44 = vmul.f32 1.442695, %v898_v38  ;;  %vm887_vm5 = vcmp.gt.f32.partialorder %v2100_v61, 0.0 }
 0x3db   :  { %v1583_v60 = vpop.f32.mrf.mxu1 }
 0x3dc   :  { %v2098_v54 = vadd.f32 %v1583_v60, %v1330_v56  ;;  %v929_v24 = vmul.f32 1.442695, %v903_v43  ;;  %v901_v25 = vmin.f32 %v2111_v6, 0.0  ;;  %vm885_vm7 = vcmp.gt.f32.partialorder %v2111_v6, 0.0 }
 0x3dd   :  { %v849_v27 = vpop.f32.mrf.mxu1 }
 0x3de   :  { %v904_v63 = vmin.f32 %v2098_v54, 0.0  ;;  %v2105_v39 = vadd.f32 %v1330_v56, %v849_v27  ;;  %v925_v35 = vmul.f32 1.442695, %v901_v25  ;;  %v893_v27 = vmin.f32 %v2140_v50, 0.0 }
 0x3df   :  { %v1586_v62 = vpop.f32.mrf.mxu1  ;;  %vm888_vm4 = vcmp.gt.f32.partialorder %v2098_v54, 0.0 }
 0x3e0   :  { %v2103_v32 = vadd.f32 %v1586_v62, %v1330_v56  ;;  %v931_v45 = vmul.f32 1.442695, %v904_v63  ;;  %v902_v0 = vmin.f32 %v2105_v39, 0.0  ;;  %vm886_vm6 = vcmp.gt.f32.partialorder %v2105_v39, 0.0 }
 0x3e1   :  { %v862_v1 = vpop.f32.mrf.mxu1 }
 0x3e2   :  { %v907_v3 = vmin.f32 %v2103_v32, 0.0  ;;  %v2108_v57 = vadd.f32 %v1330_v56, %v862_v1  ;;  %v927_v31 = vmul.f32 1.442695, %v902_v0  ;;  %vm891_vm0 = vcmp.gt.f32.partialorder %v2103_v32, 0.0 }
 0x3e3   :  { %v1587_v7 = vpop.f32.mrf.mxu1  ;;  %v911_v1 = vmul.f32 1.442695, %v894_v58 }
 0x3e4   :  { %v937_v48 = vmul.f32 1.442695, %v907_v3  ;;  %v905_v52 = vmin.f32 %v2108_v57, 0.0  ;;  %v874_v59 = vadd.f32 %v1587_v7, %v1330_v56  ;;  %vm889_vm2 = vcmp.gt.f32.partialorder %v2108_v57, 0.0 }
 0x3e5   :  { %v865_v55 = vpop.f32.mrf.mxu1 }
 0x3e6   :  { %1734 = vpow2.f32 %v937_v48  ;;  %v933_v11 = vmul.f32 1.442695, %v905_v52  ;;  %v908_v13 = vmin.f32 %v874_v59, 0.0  ;;  %v2119_v23 = vadd.f32 %v1330_v56, %v865_v55 }
 0x3e7   :  { %1736 = vpow2.f32 %v931_v45  ;;  %vm892_vm1 = vcmp.gt.f32.partialorder %v874_v59, 0.0  ;;  %v909_v55 = vmul.f32 1.442695, %v893_v27 }
 0x3e8   :  { %v939_v4 = vmul.f32 1.442695, %v908_v13  ;;  %1738 = vpow2.f32 %v933_v11  ;;  %v906_v28 = vmin.f32 %v2119_v23, 0.0  ;;  %vm890_vm3 = vcmp.gt.f32.partialorder %v2119_v23, 0.0 }
 0x3ea   :  { %1740 = vpow2.f32 %v939_v4  ;;  %v935_v34 = vmul.f32 1.442695, %v906_v28 }
 0x3eb   :  { %1742 = vpow2.f32 %v929_v24 }
 0x3ec   :  { %1744 = vpow2.f32 %v935_v34 }
 0x3ed   :  { %1746 = vpow2.f32 %v927_v31 }
 0x3ee   :  { %1748 = vpow2.f32 %v925_v35 }
 0x3ef   :  { %1750 = vpow2.f32 %v923_v37 }
 0x3f0   :  { %1752 = vpow2.f32 %v921_v41 }
 0x3f1   :  { %1754 = vpow2.f32 %v919_v44 }
 0x3f2   :  { %1756 = vpow2.f32 %v917_v51 }
 0x3f3   :  { %v1735_v2 = vpop.eup %1734  ;;  %1758 = vpow2.f32 %v915_v10 }
 0x3f4   :  { %v1737_v46 = vpop.eup %1736  ;;  %v1353_v16 = vadd.f32 -1.0, %v1735_v2  ;;  %1760 = vpow2.f32 %v913_v49 }
 0x3f5   :  { %v1739_v53 = vpop.eup %1738  ;;  %v1350_v7 = vadd.f32 -1.0, %v1737_v46  ;;  %1762 = vpow2.f32 %v911_v1 }
 0x3f6   :  { %v1351_v47 = vadd.f32 -1.0, %v1739_v53  ;;  %v971_v3 = vsel %vm891_vm0, %v2103_v32, %v1353_v16  ;;  %1764 = vpow2.f32 %v909_v55 }
 0x3f7   :  { %v1741_v60 = vpop.eup %1740  ;;  %v968_v24 = vsel %vm888_vm4, %v2098_v54, %v1350_v7 }
 0x3f8   :  { %v1354_v62 = vadd.f32 -1.0, %v1741_v60  ;;  %v1743_v63 = vpop.eup %1742  ;;  %v969_v13 = vsel %vm889_vm2, %v2108_v57, %v1351_v47 }
 0x3f9   :  { %v1745_v56 = vpop.eup %1744  ;;  %v1349_v0 = vadd.f32 -1.0, %v1743_v63 }
 0x3fa   :  { %v972_v43 = vsel %vm892_vm1, %v874_v59, %v1354_v62  ;;  %v1747_v45 = vpop.eup %1746  ;;  %v1352_v52 = vadd.f32 -1.0, %v1745_v56 }
 0x3fb   :  { %v980_v48 = vpack.c.bf16 %v972_v43, %v971_v3  ;;  %v1749_v11 = vpop.eup %1748  ;;  %v1348_v25 = vadd.f32 -1.0, %v1747_v45  ;;  %v967_v28 = vsel %vm887_vm5, %v2100_v61, %v1349_v0 }
 0x3fc   :  { %v970_v32 = vsel %vm890_vm3, %v2119_v23, %v1352_v52  ;;  %v1751_v4 = vpop.eup %1750  ;;  %v1347_v29 = vadd.f32 -1.0, %v1749_v11  ;;  %v978_v57 = vpack.c.bf16 %v968_v24, %v967_v28 }
 0x3fd   :  { %1588 = vmatprep.subr.bf16.mxu0 %v980_v48  ;;  %v979_v59 = vpack.c.bf16 %v970_v32, %v969_v13  ;;  %v1753_v31 = vpop.eup %1752  ;;  %v966_v23 = vsel %vm886_vm6, %v2105_v39, %v1348_v25  ;;  %v1346_v34 = vadd.f32 -1.0, %v1751_v4  ;;  %v1355_v32 = vld [vmem:[%s2194_s7] ss:$0 sm:$0xff]  ;;  %s1901_s7 = smov [#allocation11]  }
 0x3fe   :  { %1589 = vmatpush3.bf16.msra.mxu0 %v980_v48  ;;  %v1755_v8 = vpop.eup %1754  ;;  %v965_v54 = vsel %vm885_vm7, %v2111_v6, %v1347_v29  ;;  %v1345_v35 = vadd.f32 -1.0, %v1753_v31  ;;  %s1275_s9 = sshll.u32 %s1901_s7, 4  ;;  %s1276_s9 = int_to_ptr.vmem [resolvable:$true] %s1275_s9 }
 0x3ff   :  { %1590 = vmatprep.subr.bf16.mxu0 %v979_v59  ;;  %v1757_v37 = vpop.eup %1756  ;;  %v977_v61 = vpack.c.bf16 %v966_v23, %v965_v54  ;;  %v964_v41 = vsel %vm884_vm8, %v2114_v9, %v1346_v34  ;;  %v1344_v12 = vadd.f32 -1.0, %v1755_v8  ;;  %s1866_s10 = scalar_lea.vmem %s1276_s9, 2048  ;;  %p1871_p12 = scmp.lt.s32.totalorder %s1276_s9, %s1276_s9 }
 0x400   :  { %v1759_v38 = vpop.eup %1758  ;;  %v963_v33 = vsel %vm883_vm9, %v2117_v22, %v1345_v35  ;;  %v1343_v44 = vadd.f32 -1.0, %v1757_v37  ;;  %p1867_p11 = scmp.ne.s32.totalorder %s1276_s9, %s1866_s10  ;;  %p1872_p13 = scmp.lt.s32.totalorder %s1866_s10, %s1866_s10 }
 0x401   :  { %v1761_v39 = vpop.eup %1760  ;;  %v976_v6 = vpack.c.bf16 %v964_v41, %v963_v33  ;;  %v962_v2 = vsel %vm882_vm10, %v2124_v30, %v1344_v12  ;;  %v1342_v5 = vadd.f32 -1.0, %v1759_v38 }
 0x402   :  { %1591 = vmatpush3.bf16.msra.mxu0 %v979_v59  ;;  %v1763_v51 = vpop.eup %1762  ;;  %v961_v9 = vsel %vm881_vm11, %v2127_v26, %v1343_v44  ;;  %v1341_v46 = vadd.f32 -1.0, %v1761_v39  ;;  %p1873_p0 = por %p1872_p13, %p1871_p12 }
 0x403   :  { %1592 = vmatprep.subr.bf16.mxu0 %v978_v57  ;;  %v1765_v10 = vpop.eup %1764  ;;  %v975_v53 = vpack.c.bf16 %v962_v2, %v961_v9  ;;  %v960_v22 = vsel %vm880_vm12, %v2129_v36, %v1342_v5  ;;  %v1340_v58 = vadd.f32 -1.0, %v1763_v51  ;;  %v1700_v36 = vld [vmem:[#allocation10 + $0x8] sm:$0xff]  }
 0x404   :  { %v959_v30 = vsel %vm879_vm13, %v2132_v40, %v1341_v46  ;;  %v1339_v16 = vadd.f32 -1.0, %v1765_v10  ;;  %1632 = vmatprep.subr.bf16.mxu1 %v1700_v36  ;;  %v1701_v40 = vld [vmem:[#allocation10] sm:$0xff]   ;;  %p1874_p1 = pnand %p1873_p0, %p1867_p11 }
 0x405   :  { %v974_v60 = vpack.c.bf16 %v960_v22, %v959_v30  ;;  %v958_v26 = vsel %vm878_vm14, %v2136_v42, %v1340_v58  ;;  %1633 = vmatpush3.bf16.msra.mxu1 %v1700_v36 }
 0x406   :  { %1593 = vmatpush3.bf16.msra.mxu0 %v978_v57  ;;  %v957_v49 = vsel %vm877_vm15, %v2140_v50, %v1339_v16  ;;  %1634 = vmatprep.subr.bf16.mxu1 %v1701_v40 }
 0x407   :  { %1594 = vmatprep.subr.bf16.mxu0 %v977_v61  ;;  %v973_v27 = vpack.c.bf16 %v958_v26, %v957_v49 }
 0x409   :  { %1635 = vmatpush3.bf16.msra.mxu1 %v1701_v40 }
 0x40a   :  { %1595 = vmatpush3.bf16.msra.mxu0 %v977_v61 }
 0x40b   :  { %1596 = vmatprep.subr.bf16.mxu0 %v976_v6 }
 0x40e   :  { %1597 = vmatpush3.bf16.msra.mxu0 %v976_v6 }
 0x40f   :  { %1598 = vmatprep.subr.bf16.mxu0 %v975_v53 }
 0x412   :  { %1599 = vmatpush3.bf16.msra.mxu0 %v975_v53 }
 0x413   :  { %1600 = vmatprep.subr.bf16.mxu0 %v974_v60 }
 0x416   :  { %1601 = vmatpush3.bf16.msra.mxu0 %v974_v60 }
 0x417   :  { %1602 = vmatprep.subr.bf16.mxu0 %v973_v27 }
 0x41a   :  { %1603 = vmatpush3.bf16.msra.mxu0 %v973_v27 }
 0x41d   :  { %1605 = vmatmul.mubr.bf16.vlgmr.msra.gmra.mxu0 %v1982_v14 }
 0x41e   :  { %1608 = vmatprep.mubr.bf16.mxu0 %v1984_v15 }
 0x425   :  { %1609 = vmatmul.mubr.bf16.gmra.mxu0 %v1988_v17 }
 0x426   :  { %1612 = vmatprep.mubr.bf16.mxu0 %v1990_v18 }
 0x42d   :  { %1613 = vmatmul.mubr.bf16.gmra.mxu0 %v1994_v19 }
 0x42e   :  { %1616 = vmatprep.mubr.bf16.mxu0 %v1996_v20 }
 0x435   :  { %1617 = vmatmul.mubr.bf16.gmra.mxu0 %v2000_v21 }
 0x4dd   :  { %v1606_v42 = vpop.f32.mrf.mxu0 }
 0x4df   :  { %v1015_v14 = vpop.f32.mrf.mxu0 }
 0x4e1   :  { %v1607_v50 = vpop.f32.mrf.mxu0 }
 0x4e2   :  { %v1079_v17 = vpack.c.bf16 %v1607_v50, %v1606_v42 }
 0x4e3   :  { %v1018_v15 = vpop.f32.mrf.mxu0 }
 0x4e4   :  { %v1078_v62 = vpack.c.bf16 %v1018_v15, %v1015_v14 }
 0x4e5   :  { %v1610_v63 = vpop.f32.mrf.mxu0 }
 0x4e6   :  { %1636 = vmatprep.mubr.bf16.mxu1 %v1078_v62 }
 0x4e7   :  { %v1031_v18 = vpop.f32.mrf.mxu0  ;;  %1637 = vmatmul.mubr.bf16.vlgmr.msra.gmra.mxu1 %v1079_v17 }
 0x4e9   :  { %v1611_v19 = vpop.f32.mrf.mxu0 }
 0x4ea   :  { %v1081_v21 = vpack.c.bf16 %v1611_v19, %v1610_v63 }
 0x4eb   :  { %v1034_v20 = vpop.f32.mrf.mxu0 }
 0x4ec   :  { %v1080_v47 = vpack.c.bf16 %v1034_v20, %v1031_v18 }
 0x4ed   :  { %v1614_v56 = vpop.f32.mrf.mxu0 }
 0x4ee   :  { %1640 = vmatprep.mubr.bf16.mxu1 %v1080_v47 }
 0x4ef   :  { %v1047_v1 = vpop.f32.mrf.mxu0  ;;  %1641 = vmatmul.mubr.bf16.gmra.mxu1 %v1081_v21 }
 0x4f1   :  { %v1615_v3 = vpop.f32.mrf.mxu0 }
 0x4f2   :  { %v1083_v45 = vpack.c.bf16 %v1615_v3, %v1614_v56 }
 0x4f3   :  { %v1050_v43 = vpop.f32.mrf.mxu0 }
 0x4f4   :  { %v1082_v7 = vpack.c.bf16 %v1050_v43, %v1047_v1 }
 0x4f5   :  { %v1618_v48 = vpop.f32.mrf.mxu0 }
 0x4f6   :  { %1644 = vmatprep.mubr.bf16.mxu1 %v1082_v7 }
 0x4f7   :  { %v1063_v52 = vpop.f32.mrf.mxu0  ;;  %1645 = vmatmul.mubr.bf16.gmra.mxu1 %v1083_v45 }
 0x4f9   :  { %v1619_v55 = vpop.f32.mrf.mxu0 }
 0x4fa   :  { %v1085_v13 = vpack.c.bf16 %v1619_v55, %v1618_v48 }
 0x4fb   :  { %v1066_v0 = vpop.f32.mrf.mxu0 }
 0x4fc   :  { %v1084_v11 = vpack.c.bf16 %v1066_v0, %v1063_v52 }
 0x4fe   :  { %1648 = vmatprep.mubr.bf16.mxu1 %v1084_v11 }
 0x4ff   :  { %1649 = vmatmul.mubr.bf16.gmra.mxu1 %v1085_v13 }
 0x5a7   :  { %v1638_v59 = vpop.f32.mrf.mxu1 }
 0x5a8   :  { %v1200_v24 = vadd.f32 %v1638_v59, %v1355_v32 }
 0x5a9   :  { %v1191_v25 = vpop.f32.mrf.mxu1 }
 0x5aa   :  { %1256 = vst [vmem:[#allocation11 + $0x10] sm:$0xff] %v1200_v24  ;;  %v1192_v4 = vadd.f32 %v1355_v32, %v1191_v25 }
 0x5ab   :  { %v1639_v28 = vpop.f32.mrf.mxu1 }
 0x5ac   :  { %1254 = vst [vmem:[#allocation11] sm:$0xff] %v1192_v4  ;;  %v1203_v29 = vadd.f32 %v1639_v28, %v1355_v32 }
 0x5ad   :  { %v1194_v31 = vpop.f32.mrf.mxu1 }
 0x5ae   :  { %1257 = vst [vmem:[#allocation11 + $0x18] sm:$0xff] %v1203_v29  ;;  %v1195_v57 = vadd.f32 %v1355_v32, %v1194_v31 }
 0x5af   :  { %v1642_v23 = vpop.f32.mrf.mxu1 }
 0x5b0   :  { %1255 = vst [vmem:[#allocation11 + $0x8] sm:$0xff] %v1195_v57  ;;  %v1216_v34 = vadd.f32 %v1642_v23, %v1355_v32 }
 0x5b1   :  { %v1207_v8 = vpop.f32.mrf.mxu1 }
 0x5b2   :  { %1260 = vst [vmem:[#allocation11 + $0x30] sm:$0xff] %v1216_v34  ;;  %v1208_v54 = vadd.f32 %v1355_v32, %v1207_v8 }
 0x5b3   :  { %v1643_v35 = vpop.f32.mrf.mxu1 }
 0x5b4   :  { %1258 = vst [vmem:[#allocation11 + $0x20] sm:$0xff] %v1208_v54  ;;  %v1219_v37 = vadd.f32 %v1643_v35, %v1355_v32 }
 0x5b5   :  { %v1210_v61 = vpop.f32.mrf.mxu1 }
 0x5b6   :  { %1261 = vst [vmem:[#allocation11 + $0x38] sm:$0xff] %v1219_v37  ;;  %v1211_v38 = vadd.f32 %v1355_v32, %v1210_v61 }
 0x5b7   :  { %v1646_v41 = vpop.f32.mrf.mxu1 }
 0x5b8   :  { %1259 = vst [vmem:[#allocation11 + $0x28] sm:$0xff] %v1211_v38  ;;  %v1232_v12 = vadd.f32 %v1646_v41, %v1355_v32 }
 0x5b9   :  { %v1223_v39 = vpop.f32.mrf.mxu1 }
 0x5ba   :  { %1264 = vst [vmem:[#allocation11 + $0x50] sm:$0xff] %v1232_v12  ;;  %v1224_v33 = vadd.f32 %v1355_v32, %v1223_v39 }
 0x5bb   :  { %v1647_v44 = vpop.f32.mrf.mxu1 }
 0x5bc   :  { %1262 = vst [vmem:[#allocation11 + $0x40] sm:$0xff] %v1224_v33  ;;  %v1235_v6 = vadd.f32 %v1647_v44, %v1355_v32 }
 0x5bd   :  { %v1226_v2 = vpop.f32.mrf.mxu1 }
 0x5be   :  { %1265 = vst [vmem:[#allocation11 + $0x58] sm:$0xff] %v1235_v6  ;;  %v1227_v5 = vadd.f32 %v1355_v32, %v1226_v2 }
 0x5bf   :  { %v1650_v51 = vpop.f32.mrf.mxu1 }
 0x5c0   :  { %1263 = vst [vmem:[#allocation11 + $0x48] sm:$0xff] %v1227_v5  ;;  %v1248_v9 = vadd.f32 %v1650_v51, %v1355_v32 }
 0x5c1   :  { %v1239_v46 = vpop.f32.mrf.mxu1 }
 0x5c2   :  { %1268 = vst [vmem:[#allocation11 + $0x70] sm:$0xff] %v1248_v9  ;;  %v1240_v10 = vadd.f32 %v1355_v32, %v1239_v46 }
 0x5c3   :  { %v1651_v53 = vpop.f32.mrf.mxu1 }
 0x5c4   :  { %1266 = vst [vmem:[#allocation11 + $0x60] sm:$0xff] %v1240_v10  ;;  %v1251_v22 = vadd.f32 %v1651_v53, %v1355_v32 }
 0x5c5   :  { %v1242_v58 = vpop.f32.mrf.mxu1 }
 0x5c6   :  { %1269 = vst [vmem:[#allocation11 + $0x78] sm:$0xff] %v1251_v22  ;;  %v1243_v30 = vadd.f32 %v1355_v32, %v1242_v58 }
 0x5c8   :  { %1267 = vst [vmem:[#allocation11 + $0x68] sm:$0xff] %v1243_v30 }
 0x5c9   :  { %1877 = shalt.err (!%p1874_p1)
}
 0x5ca   :  { %s1902_s11 = smov 128   ;;  %s1903_s12 = smov 8  }
 0x5cb   :  { %1281 = dma.vmem_to_hbm [thread:$0]  %s1276_s9, 2048, %s2195_s8, [#allocation4], %s1902_s11, %s1902_s11, %s1903_s12  }
 0x5cc   :  { %1892 = dma.done.wait [#allocation4], 2048  }
 0x5cd   :  { %1893 = vsyncadd [#allocation4], 4294965248 }
 0x5ce   :  { %1285 = vsyncpa [#allocation3], 1 }
 0x5cf   :  { %1286 = vsyncpa [#allocation6], 1 }
 0x5d0   :  { %1287 = vsyncpa [#allocation9], 1 }
 0x5d1   :  { %1288 = vsyncpa [#allocation4], 1 }

</bundles_post_ra>
